<compile_context>
chip_gen: v7x
topology: tpu7x:2x2x1
jax: 0.10.0
libtpu: 0.0.40
codegen_flags: <defaults>
</compile_context>

<pallas_src>
import jax
import jax.numpy as jnp
from jax.experimental import pallas as pl
from jax.experimental.pallas import tpu as pltpu


# ---------------------------------------------------------------------------
# Parameter prep (done once, outside the per-step path).
# ---------------------------------------------------------------------------
def prepare_params(w_gates, b_gates, w_trans, b_trans, input_size, output_size,
                   matmul_dtype=jnp.bfloat16):
    i_sz, h = input_size, output_size
    assert w_gates.shape == (i_sz + h, 5 * h)
    assert w_trans.shape == (i_sz, h)
    return {
        "w_gx": w_gates[:i_sz].astype(matmul_dtype),    # [I, 5H]  (x part of W_g)
        "w_gh": w_gates[i_sz:].astype(matmul_dtype),    # [H, 5H]  (h part of W_g)
        "b_g": b_gates.reshape(1, 5 * h).astype(jnp.float32),
        "w_t": w_trans.astype(matmul_dtype),            # [I, H]
        "b_t": b_trans.reshape(1, h).astype(jnp.float32),
    }


def _row_tile(n, target=256):
    """Largest row tile <= target that evenly divides n (multiple of 8)."""
    if n <= target:
        return n
    for cand in range(target, 7, -8):
        if n % cand == 0:
            return cand
    return n


def _vmem_limit(nbytes):
    return int(max(4 << 20, min(3 * nbytes, 48 << 20)))


# ---------------------------------------------------------------------------
# Kernel 1: hoisted input projection for the whole sequence.
#   xg = x @ W_gx + b_g   (x-part of the gate pre-activations)
#   xt = x @ W_t  + b_t   (highway transform)
# ---------------------------------------------------------------------------
def _input_proj_kernel(x_ref, wgx_ref, bg_ref, wt_ref, bt_ref, xg_ref, xt_ref):
    x = x_ref[...]
    xg_ref[...] = (jnp.dot(x, wgx_ref[...], preferred_element_type=jnp.float32)
                   + bg_ref[...]).astype(xg_ref.dtype)
    xt_ref[...] = (jnp.dot(x, wt_ref[...], preferred_element_type=jnp.float32)
                   + bt_ref[...]).astype(xt_ref.dtype)


def _input_projection(x2d, params):
    m, i_sz = x2d.shape
    five_h = params["w_gx"].shape[1]
    h = five_h // 5
    tm = _row_tile(m)

    vmem = 2 * (tm * i_sz * x2d.dtype.itemsize            # x tiles (dbl buf)
                + tm * five_h * 4 + tm * h * 4             # output tiles
                + i_sz * five_h * 2 + i_sz * h * 2)        # bf16 weights
    return pl.pallas_call(
        _input_proj_kernel,
        out_shape=(jax.ShapeDtypeStruct((m, five_h), jnp.float32),
                   jax.ShapeDtypeStruct((m, h), jnp.float32)),
        grid=(m // tm,),
        in_specs=[
            pl.BlockSpec((tm, i_sz), lambda r: (r, 0)),       # x rows
            pl.BlockSpec((i_sz, five_h), lambda r: (0, 0)),   # W_gx (resident)
            pl.BlockSpec((1, five_h), lambda r: (0, 0)),      # b_g
            pl.BlockSpec((i_sz, h), lambda r: (0, 0)),        # W_t (resident)
            pl.BlockSpec((1, h), lambda r: (0, 0)),           # b_t
        ],
        out_specs=(pl.BlockSpec((tm, five_h), lambda r: (r, 0)),
                   pl.BlockSpec((tm, h), lambda r: (r, 0))),
        compiler_params=pltpu.CompilerParams(
            dimension_semantics=("parallel",),
            vmem_limit_bytes=_vmem_limit(vmem)),
    )(x2d, params["w_gx"], params["b_g"], params["w_t"], params["b_t"])


# ---------------------------------------------------------------------------
# Kernel 2: time-fused recurrence.  Only h @ W_gh + elementwise per step;
# W_gh stays resident in VMEM, state carried in f32 VMEM scratch.
# ---------------------------------------------------------------------------
def _recurrence_kernel(xg_ref, xt_ref, c0_ref, h0_ref, wgh_ref,
                       hseq_ref, cfin_ref, hfin_ref,
                       c_st, h_st):
    t = pl.program_id(1)
    hidden = c_st.shape[1]

    @pl.when(t == 0)
    def _():
        c_st[...] = c0_ref[...].astype(jnp.float32)
        h_st[...] = h0_ref[...].astype(jnp.float32)

    h_prev = h_st[...]
    # gates = h @ W_gh (bf16 MXU, f32 acc) + precomputed x-part (f32)
    gates = (jnp.dot(h_prev.astype(wgh_ref.dtype), wgh_ref[...],
                     preferred_element_type=jnp.float32)
             + xg_ref[...])

    i_g = jax.nn.sigmoid(gates[:, 0 * hidden:1 * hidden])
    j_g = jnp.tanh(gates[:, 1 * hidden:2 * hidden])
    f_g = jax.nn.sigmoid(gates[:, 2 * hidden:3 * hidden])
    o_g = jax.nn.sigmoid(gates[:, 3 * hidden:4 * hidden])
    t_g = jax.nn.sigmoid(gates[:, 4 * hidden:5 * hidden])

    new_c = f_g * c_st[...] + i_g * j_g
    new_h = t_g * (o_g * jnp.tanh(new_c)) + (1.0 - t_g) * xt_ref[...]

    c_st[...] = new_c
    h_st[...] = new_h
    hseq_ref[...] = new_h.astype(hseq_ref.dtype)

    @pl.when(t == pl.num_programs(1) - 1)
    def _():
        cfin_ref[...] = new_c.astype(cfin_ref.dtype)
        hfin_ref[...] = new_h.astype(hfin_ref.dtype)


@jax.jit
def highway_lstm_sequence(x_seq, c0, h0, params):
    """Runs the HighwayLSTMCell recurrence over a whole sequence.

    x_seq: [T, B, I], c0/h0: [B, H].  Returns (h_seq [T, B, H], (c_T, h_T))."""
    t_len, batch, in_sz = x_seq.shape
    hidden = c0.shape[1]
    five_h = 5 * hidden

    # Hoisted x-projections for the whole sequence: one fat [T*B, I] matmul.
    xg, xt = _input_projection(
        x_seq.reshape(t_len * batch, in_sz).astype(params["w_gx"].dtype), params)
    xg = xg.reshape(t_len, batch, five_h)
    xt = xt.reshape(t_len, batch, hidden)

    bb = _row_tile(batch, target=256)
    n_b = batch // bb
    out_dt = x_seq.dtype

    vmem = (2 * hidden * five_h * 2                        # W_gh (bf16)
            + 2 * bb * five_h * 4 + 2 * bb * hidden * 4    # xg / xt tiles
            + 4 * bb * hidden * 4                           # c0 / h0 tiles
            + 2 * bb * hidden * out_dt.itemsize             # h_seq tile
            + 4 * bb * hidden * 4                           # final c / h tiles
            + 2 * bb * hidden * 4)                          # state scratch

    h_seq, c_fin, h_fin = pl.pallas_call(
        _recurrence_kernel,
        out_shape=(jax.ShapeDtypeStruct((t_len, batch, hidden), out_dt),
                   jax.ShapeDtypeStruct((batch, hidden), jnp.float32),
                   jax.ShapeDtypeStruct((batch, hidden), jnp.float32)),
        grid=(n_b, t_len),
        in_specs=[
            pl.BlockSpec((None, bb, five_h), lambda b, t: (t, b, 0)),   # xg
            pl.BlockSpec((None, bb, hidden), lambda b, t: (t, b, 0)),   # xt
            pl.BlockSpec((bb, hidden), lambda b, t: (b, 0)),            # c0
            pl.BlockSpec((bb, hidden), lambda b, t: (b, 0)),            # h0
            pl.BlockSpec((hidden, five_h), lambda b, t: (0, 0)),        # W_gh (resident)
        ],
        out_specs=(
            pl.BlockSpec((None, bb, hidden), lambda b, t: (t, b, 0)),   # h per step
            pl.BlockSpec((bb, hidden), lambda b, t: (b, 0)),            # final c
            pl.BlockSpec((bb, hidden), lambda b, t: (b, 0)),            # final h
        ),
        scratch_shapes=[pltpu.VMEM((bb, hidden), jnp.float32),          # c state
                        pltpu.VMEM((bb, hidden), jnp.float32)],         # h state
        compiler_params=pltpu.CompilerParams(
            dimension_semantics=("parallel", "arbitrary"),
            vmem_limit_bytes=_vmem_limit(vmem)),
    )(xg, xt, c0, h0, params["w_gh"])

    return h_seq, (c_fin, h_fin)


def highway_lstm_cell(x, state, params):
    """Single HighwayLSTMCell step (matches the PyTorch module forward)."""
    c, h = state
    _, (new_c, new_h) = highway_lstm_sequence(x[None], c, h, params)
    return new_h, (new_c, new_h)


# ---------------------------------------------------------------------------
# Pure-JAX f32 reference.
# ---------------------------------------------------------------------------
def _reference_step(x, c, h, w_gates, b_gates, w_trans, b_trans):
    hidden = c.shape[1]
    gates = jnp.concatenate([x, h], axis=1) @ w_gates + b_gates
    i, j, f, o, t = [gates[:, k * hidden:(k + 1) * hidden] for k in range(5)]
    i, f, o, t = map(jax.nn.sigmoid, (i, f, o, t))
    new_c = f * c + i * jnp.tanh(j)
    new_h = t * (o * jnp.tanh(new_c)) + (1.0 - t) * (x @ w_trans + b_trans)
    return new_h, new_c


if __name__ == "__main__":
    # Small, TPU-friendly shapes (H multiple of 128 -> lane-aligned gate slices).
    T, B, I, H = 8, 8, 128, 128
    key = jax.random.PRNGKey(0)
    kx, kc, kh, kwg, kbg, kwt, kbt = jax.random.split(key, 7)

    x_seq = jax.random.normal(kx, (T, B, I), dtype=jnp.float32)
    c0 = jax.random.normal(kc, (B, H), dtype=jnp.float32)
    h0 = jax.random.normal(kh, (B, H), dtype=jnp.float32)

    # TODO(synk): module uses orthogonal init; a scaled normal stands in here
    # (same shapes, deterministic from PRNGKey(0)) — init is not forward-pass.
    w_gates = 0.05 * jax.random.normal(kwg, (I + H, 5 * H), dtype=jnp.float32)
    b_gates = 0.05 * jax.random.normal(kbg, (5 * H,), dtype=jnp.float32)
    w_trans = 0.05 * jax.random.normal(kwt, (I, H), dtype=jnp.float32)
    b_trans = 0.05 * jax.random.normal(kbt, (H,), dtype=jnp.float32)

    params = prepare_params(w_gates, b_gates, w_trans, b_trans, I, H)

    # --- single step (module forward semantics) ---
    new_h, (new_c, _) = highway_lstm_cell(x_seq[0], (c0, h0), params)
    jax.block_until_ready((new_h, new_c))
    ref_h, ref_c = _reference_step(x_seq[0], c0, h0, w_gates, b_gates,
                                   w_trans, b_trans)
    # bf16 matmul operands -> looser tolerance vs. the f32 reference.
    assert jnp.allclose(new_h, ref_h, atol=2e-2, rtol=2e-2)
    assert jnp.allclose(new_c, ref_c, atol=2e-2, rtol=2e-2)

    # --- full sequence (time-fused kernel, weights resident in VMEM) ---
    h_seq, (c_fin, h_fin) = highway_lstm_sequence(x_seq, c0, h0, params)
    jax.block_until_ready((h_seq, c_fin, h_fin))

    rc, rh = c0, h0
    ref_hs = []
    for t in range(T):
        rh, rc = _reference_step(x_seq[t], rc, rh, w_gates, b_gates,
                                 w_trans, b_trans)
        ref_hs.append(rh)
    ref_hs = jnp.stack(ref_hs)
    assert jnp.allclose(h_seq, ref_hs, atol=2e-2, rtol=2e-2)
    assert jnp.allclose(c_fin, rc, atol=2e-2, rtol=2e-2)
    assert jnp.allclose(h_fin, rh, atol=2e-2, rtol=2e-2)

    print("KERNEL_OK")
</pallas_src>

<mosaic_0001>
module attributes {stable_mosaic.version = 11 : i64} {
  func.func @_input_proj_kernel(%arg0: i32, %arg1: memref<8x128xbf16, #tpu.memory_space<vmem>>, %arg2: memref<128x640xbf16, #tpu.memory_space<vmem>>, %arg3: memref<1x640xf32, #tpu.memory_space<vmem>>, %arg4: memref<128x128xbf16, #tpu.memory_space<vmem>>, %arg5: memref<1x128xf32, #tpu.memory_space<vmem>>, %arg6: memref<8x640xf32, #tpu.memory_space<vmem>>, %arg7: memref<8x128xf32, #tpu.memory_space<vmem>>) attributes {dimension_semantics = [#tpu.dimension_semantics<parallel>], iteration_bounds = array<i64: 1>, scalar_prefetch = 0 : i64, scratch_operands = 0 : i64, tpu.core_type = #tpu.core_type<tc>, window_params = [{transform_indices = @transform_0, window_bounds = array<i64: 8, 128>}, {pipeline_mode = #tpu.pipeline_mode<synchronous>, transform_indices = @transform_1, window_bounds = array<i64: 128, 640>}, {pipeline_mode = #tpu.pipeline_mode<synchronous>, transform_indices = @transform_2, window_bounds = array<i64: 1, 640>}, {pipeline_mode = #tpu.pipeline_mode<synchronous>, transform_indices = @transform_3, window_bounds = array<i64: 128, 128>}, {pipeline_mode = #tpu.pipeline_mode<synchronous>, transform_indices = @transform_4, window_bounds = array<i64: 1, 128>}, {transform_indices = @transform_5, window_bounds = array<i64: 8, 640>}, {transform_indices = @transform_6, window_bounds = array<i64: 8, 128>}]} {
    %c0 = arith.constant 0 : index
    %c0_0 = arith.constant 0 : index
    %0 = vector.load %arg1[%c0, %c0_0] : memref<8x128xbf16, #tpu.memory_space<vmem>>, vector<8x128xbf16>
    %c0_1 = arith.constant 0 : index
    %c0_2 = arith.constant 0 : index
    %1 = vector.load %arg2[%c0_1, %c0_2] : memref<128x640xbf16, #tpu.memory_space<vmem>>, vector<128x640xbf16>
    %cst = arith.constant dense<0.000000e+00> : vector<8x640xf32>
    %2 = tpu.matmul %0, %1, %cst {dimension_numbers = #tpu.dot_dimension_numbers<[1], [0], [0], [1], [0, 0, 1, 1], [], []>} : vector<8x128xbf16>, vector<128x640xbf16>, vector<8x640xf32> -> vector<8x640xf32>
    %c0_3 = arith.constant 0 : index
    %c0_4 = arith.constant 0 : index
    %3 = vector.load %arg3[%c0_3, %c0_4] : memref<1x640xf32, #tpu.memory_space<vmem>>, vector<1x640xf32>
    %4 = vector.broadcast %3 : vector<1x640xf32> to vector<8x640xf32>
    %5 = arith.addf %2, %4 : vector<8x640xf32>
    %c0_5 = arith.constant 0 : index
    %c0_6 = arith.constant 0 : index
    %6 = vector.load %arg6[%c0_5, %c0_6] : memref<8x640xf32, #tpu.memory_space<vmem>>, vector<8x640xf32>
    tpu.vector_store %arg6[%c0_5, %c0_6], %5 {strides = array<i32>} : memref<8x640xf32, #tpu.memory_space<vmem>>, vector<8x640xf32>,
    %c0_7 = arith.constant 0 : index
    %c0_8 = arith.constant 0 : index
    %7 = vector.load %arg4[%c0_7, %c0_8] : memref<128x128xbf16, #tpu.memory_space<vmem>>, vector<128x128xbf16>
    %cst_9 = arith.constant dense<0.000000e+00> : vector<8x128xf32>
    %8 = tpu.matmul %0, %7, %cst_9 {dimension_numbers = #tpu.dot_dimension_numbers<[1], [0], [0], [1], [0, 0, 1, 1], [], []>} : vector<8x128xbf16>, vector<128x128xbf16>, vector<8x128xf32> -> vector<8x128xf32>
    %c0_10 = arith.constant 0 : index
    %c0_11 = arith.constant 0 : index
    %9 = vector.load %arg5[%c0_10, %c0_11] : memref<1x128xf32, #tpu.memory_space<vmem>>, vector<1x128xf32>
    %10 = vector.broadcast %9 : vector<1x128xf32> to vector<8x128xf32>
    %11 = arith.addf %8, %10 : vector<8x128xf32>
    %c0_12 = arith.constant 0 : index
    %c0_13 = arith.constant 0 : index
    %12 = vector.load %arg7[%c0_12, %c0_13] : memref<8x128xf32, #tpu.memory_space<vmem>>, vector<8x128xf32>
    tpu.vector_store %arg7[%c0_12, %c0_13], %11 {strides = array<i32>} : memref<8x128xf32, #tpu.memory_space<vmem>>, vector<8x128xf32>,
    return
  }
  func.func @transform_0(%arg0: i32) -> (i32, i32) {
    %c0_i32 = arith.constant 0 : i32
    %c0_i32_0 = arith.constant 0 : i32
    return %arg0, %c0_i32 : i32, i32
  }
  func.func @transform_1(%arg0: i32) -> (i32, i32) {
    %c0_i32 = arith.constant 0 : i32
    %c0_i32_0 = arith.constant 0 : i32
    %c0_i32_1 = arith.constant 0 : i32
    return %c0_i32, %c0_i32_0 : i32, i32
  }
  func.func @transform_2(%arg0: i32) -> (i32, i32) {
    %c0_i32 = arith.constant 0 : i32
    %c0_i32_0 = arith.constant 0 : i32
    %c0_i32_1 = arith.constant 0 : i32
    return %c0_i32, %c0_i32_0 : i32, i32
  }
  func.func @transform_3(%arg0: i32) -> (i32, i32) {
    %c0_i32 = arith.constant 0 : i32
    %c0_i32_0 = arith.constant 0 : i32
    %c0_i32_1 = arith.constant 0 : i32
    return %c0_i32, %c0_i32_0 : i32, i32
  }
  func.func @transform_4(%arg0: i32) -> (i32, i32) {
    %c0_i32 = arith.constant 0 : i32
    %c0_i32_0 = arith.constant 0 : i32
    %c0_i32_1 = arith.constant 0 : i32
    return %c0_i32, %c0_i32_0 : i32, i32
  }
  func.func @transform_5(%arg0: i32) -> (i32, i32) {
    %c0_i32 = arith.constant 0 : i32
    %c0_i32_0 = arith.constant 0 : i32
    return %arg0, %c0_i32 : i32, i32
  }
  func.func @transform_6(%arg0: i32) -> (i32, i32) {
    %c0_i32 = arith.constant 0 : i32
    %c0_i32_0 = arith.constant 0 : i32
    return %arg0, %c0_i32 : i32, i32
  }
}

module attributes {stable_mosaic.version = 11 : i64} {
  func.func @_recurrence_kernel(%arg0: i32, %arg1: i32, %arg2: memref<1x8x640xf32, #tpu.memory_space<vmem>>, %arg3: memref<1x8x128xf32, #tpu.memory_space<vmem>>, %arg4: memref<8x128xf32, #tpu.memory_space<vmem>>, %arg5: memref<8x128xf32, #tpu.memory_space<vmem>>, %arg6: memref<128x640xbf16, #tpu.memory_space<vmem>>, %arg7: memref<1x8x128xf32, #tpu.memory_space<vmem>>, %arg8: memref<8x128xf32, #tpu.memory_space<vmem>>, %arg9: memref<8x128xf32, #tpu.memory_space<vmem>>, %arg10: memref<8x128xf32, #tpu.memory_space<vmem>>, %arg11: memref<8x128xf32, #tpu.memory_space<vmem>>) attributes {dimension_semantics = [#tpu.dimension_semantics<parallel>, #tpu.dimension_semantics<arbitrary>], iteration_bounds = array<i64: 1, 1>, scalar_prefetch = 0 : i64, scratch_operands = 2 : i64, tpu.core_type = #tpu.core_type<tc>, window_params = [{transform_indices = @transform_0, window_bounds = array<i64: 1, 8, 640>}, {transform_indices = @transform_1, window_bounds = array<i64: 1, 8, 128>}, {transform_indices = @transform_2, window_bounds = array<i64: 8, 128>}, {transform_indices = @transform_3, window_bounds = array<i64: 8, 128>}, {pipeline_mode = #tpu.pipeline_mode<synchronous>, transform_indices = @transform_4, window_bounds = array<i64: 128, 640>}, {transform_indices = @transform_5, window_bounds = array<i64: 1, 8, 128>}, {transform_indices = @transform_6, window_bounds = array<i64: 8, 128>}, {transform_indices = @transform_7, window_bounds = array<i64: 8, 128>}]} {
    %c0_i32 = arith.constant 0 : i32
    %0 = arith.cmpi eq, %arg1, %c0_i32 : i32
    %1 = arith.extui %0 : i1 to i32
    %c0_i32_0 = arith.constant 0 : i32
    %2 = arith.cmpi ne, %1, %c0_i32_0 : i32
    scf.if %2 {
      %c0_26 = arith.constant 0 : index
      %c0_27 = arith.constant 0 : index
      %57 = vector.load %arg4[%c0_26, %c0_27] : memref<8x128xf32, #tpu.memory_space<vmem>>, vector<8x128xf32>
      %c0_28 = arith.constant 0 : index
      %c0_29 = arith.constant 0 : index
      %58 = vector.load %arg10[%c0_28, %c0_29] : memref<8x128xf32, #tpu.memory_space<vmem>>, vector<8x128xf32>
      tpu.vector_store %arg10[%c0_28, %c0_29], %57 {strides = array<i32>} : memref<8x128xf32, #tpu.memory_space<vmem>>, vector<8x128xf32>,
      %c0_30 = arith.constant 0 : index
      %c0_31 = arith.constant 0 : index
      %59 = vector.load %arg5[%c0_30, %c0_31] : memref<8x128xf32, #tpu.memory_space<vmem>>, vector<8x128xf32>
      %c0_32 = arith.constant 0 : index
      %c0_33 = arith.constant 0 : index
      %60 = vector.load %arg11[%c0_32, %c0_33] : memref<8x128xf32, #tpu.memory_space<vmem>>, vector<8x128xf32>
      tpu.vector_store %arg11[%c0_32, %c0_33], %59 {strides = array<i32>} : memref<8x128xf32, #tpu.memory_space<vmem>>, vector<8x128xf32>,
    } else {
    }
    %c0 = arith.constant 0 : index
    %c0_1 = arith.constant 0 : index
    %3 = vector.load %arg11[%c0, %c0_1] : memref<8x128xf32, #tpu.memory_space<vmem>>, vector<8x128xf32>
    %4 = arith.truncf %3 : vector<8x128xf32> to vector<8x128xbf16>
    %c0_2 = arith.constant 0 : index
    %c0_3 = arith.constant 0 : index
    %5 = vector.load %arg6[%c0_2, %c0_3] : memref<128x640xbf16, #tpu.memory_space<vmem>>, vector<128x640xbf16>
    %cst = arith.constant dense<0.000000e+00> : vector<8x640xf32>
    %6 = tpu.matmul %4, %5, %cst {dimension_numbers = #tpu.dot_dimension_numbers<[1], [0], [0], [1], [0, 0, 1, 1], [], []>} : vector<8x128xbf16>, vector<128x640xbf16>, vector<8x640xf32> -> vector<8x640xf32>
    %c0_4 = arith.constant 0 : index
    %c0_5 = arith.constant 0 : index
    %c0_6 = arith.constant 0 : index
    %7 = vector.load %arg2[%c0_4, %c0_5, %c0_6] : memref<1x8x640xf32, #tpu.memory_space<vmem>>, vector<1x8x640xf32>
    %8 = vector.shape_cast %7 : vector<1x8x640xf32> to vector<8x640xf32>
    %9 = arith.addf %6, %8 : vector<8x640xf32>
    %10 = vector.extract_strided_slice %9 {offsets = [0, 0], sizes = [8, 128], strides = [1, 1]} : vector<8x640xf32> to vector<8x128xf32>
    %11 = arith.negf %10 : vector<8x128xf32>
    %12 = math.exp %11 : vector<8x128xf32>
    %cst_7 = arith.constant 1.000000e+00 : f32
    %13 = vector.broadcast %cst_7 : f32 to vector<8x128xf32>
    %14 = arith.addf %13, %12 : vector<8x128xf32>
    %15 = arith.divf %13, %14 : vector<8x128xf32>
    %16 = vector.extract_strided_slice %9 {offsets = [0, 128], sizes = [8, 128], strides = [1, 1]} : vector<8x640xf32> to vector<8x128xf32>
    %17 = math.tanh %16 : vector<8x128xf32>
    %18 = vector.extract_strided_slice %9 {offsets = [0, 256], sizes = [8, 128], strides = [1, 1]} : vector<8x640xf32> to vector<8x128xf32>
    %19 = arith.negf %18 : vector<8x128xf32>
    %20 = math.exp %19 : vector<8x128xf32>
    %cst_8 = arith.constant 1.000000e+00 : f32
    %21 = vector.broadcast %cst_8 : f32 to vector<8x128xf32>
    %22 = arith.addf %21, %20 : vector<8x128xf32>
    %23 = arith.divf %21, %22 : vector<8x128xf32>
    %24 = vector.extract_strided_slice %9 {offsets = [0, 384], sizes = [8, 128], strides = [1, 1]} : vector<8x640xf32> to vector<8x128xf32>
    %25 = arith.negf %24 : vector<8x128xf32>
    %26 = math.exp %25 : vector<8x128xf32>
    %cst_9 = arith.constant 1.000000e+00 : f32
    %27 = vector.broadcast %cst_9 : f32 to vector<8x128xf32>
    %28 = arith.addf %27, %26 : vector<8x128xf32>
    %29 = arith.divf %27, %28 : vector<8x128xf32>
    %30 = vector.extract_strided_slice %9 {offsets = [0, 512], sizes = [8, 128], strides = [1, 1]} : vector<8x640xf32> to vector<8x128xf32>
    %31 = arith.negf %30 : vector<8x128xf32>
    %32 = math.exp %31 : vector<8x128xf32>
    %cst_10 = arith.constant 1.000000e+00 : f32
    %33 = vector.broadcast %cst_10 : f32 to vector<8x128xf32>
    %34 = arith.addf %33, %32 : vector<8x128xf32>
    %35 = arith.divf %33, %34 : vector<8x128xf32>
    %c0_11 = arith.constant 0 : index
    %c0_12 = arith.constant 0 : index
    %36 = vector.load %arg10[%c0_11, %c0_12] : memref<8x128xf32, #tpu.memory_space<vmem>>, vector<8x128xf32>
    %37 = arith.mulf %23, %36 : vector<8x128xf32>
    %38 = arith.mulf %15, %17 : vector<8x128xf32>
    %39 = arith.addf %37, %38 : vector<8x128xf32>
    %40 = math.tanh %39 : vector<8x128xf32>
    %41 = arith.mulf %29, %40 : vector<8x128xf32>
    %42 = arith.mulf %35, %41 : vector<8x128xf32>
    %cst_13 = arith.constant 1.000000e+00 : f32
    %43 = vector.broadcast %cst_13 : f32 to vector<8x128xf32>
    %44 = arith.subf %43, %35 : vector<8x128xf32>
    %c0_14 = arith.constant 0 : index
    %c0_15 = arith.constant 0 : index
    %c0_16 = arith.constant 0 : index
    %45 = vector.load %arg3[%c0_14, %c0_15, %c0_16] : memref<1x8x128xf32, #tpu.memory_space<vmem>>, vector<1x8x128xf32>
    %46 = vector.shape_cast %45 : vector<1x8x128xf32> to vector<8x128xf32>
    %47 = arith.mulf %44, %46 : vector<8x128xf32>
    %48 = arith.addf %42, %47 : vector<8x128xf32>
    %c0_17 = arith.constant 0 : index
    %c0_18 = arith.constant 0 : index
    %49 = vector.load %arg10[%c0_17, %c0_18] : memref<8x128xf32, #tpu.memory_space<vmem>>, vector<8x128xf32>
    tpu.vector_store %arg10[%c0_17, %c0_18], %39 {strides = array<i32>} : memref<8x128xf32, #tpu.memory_space<vmem>>, vector<8x128xf32>,
    %c0_19 = arith.constant 0 : index
    %c0_20 = arith.constant 0 : index
    %50 = vector.load %arg11[%c0_19, %c0_20] : memref<8x128xf32, #tpu.memory_space<vmem>>, vector<8x128xf32>
    tpu.vector_store %arg11[%c0_19, %c0_20], %48 {strides = array<i32>} : memref<8x128xf32, #tpu.memory_space<vmem>>, vector<8x128xf32>,
    %c0_21 = arith.constant 0 : index
    %c0_22 = arith.constant 0 : index
    %c0_23 = arith.constant 0 : index
    %51 = vector.load %arg7[%c0_21, %c0_22, %c0_23] : memref<1x8x128xf32, #tpu.memory_space<vmem>>, vector<1x8x128xf32>
    %52 = vector.shape_cast %51 : vector<1x8x128xf32> to vector<8x128xf32>
    %53 = vector.shape_cast %48 : vector<8x128xf32> to vector<1x8x128xf32>
    tpu.vector_store %arg7[%c0_21, %c0_22, %c0_23], %53 {strides = array<i32>} : memref<1x8x128xf32, #tpu.memory_space<vmem>>, vector<1x8x128xf32>,
    %c0_i32_24 = arith.constant 0 : i32
    %54 = arith.cmpi eq, %arg1, %c0_i32_24 : i32
    %55 = arith.extui %54 : i1 to i32
    %c0_i32_25 = arith.constant 0 : i32
    %56 = arith.cmpi ne, %55, %c0_i32_25 : i32
    scf.if %56 {
      %c0_26 = arith.constant 0 : index
      %c0_27 = arith.constant 0 : index
      %57 = vector.load %arg8[%c0_26, %c0_27] : memref<8x128xf32, #tpu.memory_space<vmem>>, vector<8x128xf32>
      tpu.vector_store %arg8[%c0_26, %c0_27], %39 {strides = array<i32>} : memref<8x128xf32, #tpu.memory_space<vmem>>, vector<8x128xf32>,
      %c0_28 = arith.constant 0 : index
      %c0_29 = arith.constant 0 : index
      %58 = vector.load %arg9[%c0_28, %c0_29] : memref<8x128xf32, #tpu.memory_space<vmem>>, vector<8x128xf32>
      tpu.vector_store %arg9[%c0_28, %c0_29], %48 {strides = array<i32>} : memref<8x128xf32, #tpu.memory_space<vmem>>, vector<8x128xf32>,
    } else {
    }
    return
  }
  func.func @transform_0(%arg0: i32, %arg1: i32) -> (i32, i32, i32) {
    %c0_i32 = arith.constant 0 : i32
    %c0_i32_0 = arith.constant 0 : i32
    return %arg1, %arg0, %c0_i32 : i32, i32, i32
  }
  func.func @transform_1(%arg0: i32, %arg1: i32) -> (i32, i32, i32) {
    %c0_i32 = arith.constant 0 : i32
    %c0_i32_0 = arith.constant 0 : i32
    return %arg1, %arg0, %c0_i32 : i32, i32, i32
  }
  func.func @transform_2(%arg0: i32, %arg1: i32) -> (i32, i32) {
    %c0_i32 = arith.constant 0 : i32
    %c0_i32_0 = arith.constant 0 : i32
    return %arg0, %c0_i32 : i32, i32
  }
  func.func @transform_3(%arg0: i32, %arg1: i32) -> (i32, i32) {
    %c0_i32 = arith.constant 0 : i32
    %c0_i32_0 = arith.constant 0 : i32
    return %arg0, %c0_i32 : i32, i32
  }
  func.func @transform_4(%arg0: i32, %arg1: i32) -> (i32, i32) {
    %c0_i32 = arith.constant 0 : i32
    %c0_i32_0 = arith.constant 0 : i32
    %c0_i32_1 = arith.constant 0 : i32
    return %c0_i32, %c0_i32_0 : i32, i32
  }
  func.func @transform_5(%arg0: i32, %arg1: i32) -> (i32, i32, i32) {
    %c0_i32 = arith.constant 0 : i32
    %c0_i32_0 = arith.constant 0 : i32
    return %arg1, %arg0, %c0_i32 : i32, i32, i32
  }
  func.func @transform_6(%arg0: i32, %arg1: i32) -> (i32, i32) {
    %c0_i32 = arith.constant 0 : i32
    %c0_i32_0 = arith.constant 0 : i32
    return %arg0, %c0_i32 : i32, i32
  }
  func.func @transform_7(%arg0: i32, %arg1: i32) -> (i32, i32) {
    %c0_i32 = arith.constant 0 : i32
    %c0_i32_0 = arith.constant 0 : i32
    return %arg0, %c0_i32 : i32, i32
  }
}

</mosaic_0001>

<bundles_post_ra>
// kernel: highway_lstm_sequence.3
= control target key start
LH: loop header
LB: loop body
LE: loop exit
PB: predicated region body
PF: predicated region fallthrough
CT: control target
= control target key end

     0   :  { %13 = vsyncpa [#allocation5], 0  ;;  %v729_v2 = vmov 0   ;;  %s955_s0 = inlined_call_operand.vmem [shape: f32[1,8,640], index: 0, kind: input, shape index: {}]   ;;  %s956_s1 = inlined_call_operand.vmem [shape: f32[1,8,128], index: 1, kind: input, shape index: {}]   ;;  %s957_s2 = inlined_call_operand.vmem [shape: f32[8,128], index: 2, kind: input, shape index: {}]   ;;  %s958_s3 = inlined_call_operand.vmem [shape: f32[8,128], index: 3, kind: input, shape index: {}]   ;;  %s959_s4 = inlined_call_operand.vmem [shape: bf16[128,640], index: 4, kind: input, shape index: {}]   ;;  %s960_s5 = inlined_call_operand.hbm [shape: f32[1,8,128], index: 5, kind: output, shape index: {0}]   ;;  %s961_s6 = inlined_call_operand.hbm [shape: f32[8,128], index: 6, kind: output, shape index: {1}]   ;;  %s962_s7 = inlined_call_operand.hbm [shape: f32[8,128], index: 7, kind: output, shape index: {2}]  }
   0x1   :  { %v583_v0 = vld [vmem:[%s959_s4 + $0x4] ss:$20 sps:$4 sm:$0xff]   ;;  %v585_v1 = vld [vmem:[%s959_s4 + $0xc] ss:$20 sps:$4 sm:$0xff]   ;;  %329 = vmatprep.mubr.bf16.mxu0 %v729_v2  ;;  %370 = vmatprep.mubr.bf16.mxu1 %v729_v2  ;;  %v588_v4 = vld [vmem:[%s959_s4 + $0x8] ss:$20 sps:$4 sm:$0xff]  }
   0x2   :  { %297 = vmatprep.subr.bf16.mxu0 %v583_v0  ;;  %v587_v3 = vld [vmem:[%s959_s4] ss:$20 sps:$4 sm:$0xff]   ;;  %338 = vmatprep.subr.bf16.mxu1 %v585_v1  ;;  %v593_v7 = vld [vmem:[%s959_s4 + $0x28] ss:$20 sps:$4 sm:$0xff]   ;;  %v594_v8 = vld [vmem:[%s959_s4 + $0x30] ss:$20 sps:$4 sm:$0xff]  }
   0x3   :  { %v589_v5 = vld [vmem:[%s959_s4 + $0x2c] ss:$20 sps:$4 sm:$0xff]   ;;  %298 = vmatpush1.bf16.msra.mxu0 %v587_v3  ;;  %339 = vmatpush1.bf16.msra.mxu1 %v588_v4  ;;  %v591_v6 = vld [vmem:[%s959_s4 + $0x34] ss:$20 sps:$4 sm:$0xff]   ;;  %v597_v10 = vld [vmem:[%s959_s4 + $0x5c] ss:$20 sps:$4 sm:$0xff]  }
   0x4   :  { %299 = vmatprep.subr.bf16.mxu0 %v589_v5  ;;  %340 = vmatprep.subr.bf16.mxu1 %v591_v6  ;;  %v595_v9 = vld [vmem:[%s959_s4 + $0x54] ss:$20 sps:$4 sm:$0xff]   ;;  %v599_v11 = vld [vmem:[%s959_s4 + $0x50] ss:$20 sps:$4 sm:$0xff]   ;;  %v600_v12 = vld [vmem:[%s959_s4 + $0x58] ss:$20 sps:$4 sm:$0xff]  }
   0x5   :  { %v601_v13 = vld [vmem:[%s959_s4 + $0x7c] ss:$20 sps:$4 sm:$0xff]   ;;  %v603_v14 = vld [vmem:[%s959_s4 + $0x84] ss:$20 sps:$4 sm:$0xff]   ;;  %v606_v16 = vld [vmem:[%s959_s4 + $0x80] ss:$20 sps:$4 sm:$0xff]  }
   0x6   :  { %v605_v15 = vld [vmem:[%s959_s4 + $0x78] ss:$20 sps:$4 sm:$0xff]   ;;  %v611_v19 = vld [vmem:[%s959_s4 + $0xa0] ss:$20 sps:$4 sm:$0xff]   ;;  %v612_v20 = vld [vmem:[%s959_s4 + $0xa8] ss:$20 sps:$4 sm:$0xff]  }
   0x7   :  { %300 = vmatpush1.bf16.msra.mxu0 %v593_v7  ;;  %341 = vmatpush1.bf16.msra.mxu1 %v594_v8  ;;  %v607_v17 = vld [vmem:[%s959_s4 + $0xa4] ss:$20 sps:$4 sm:$0xff]   ;;  %v609_v18 = vld [vmem:[%s959_s4 + $0xac] ss:$20 sps:$4 sm:$0xff]   ;;  %v615_v22 = vld [vmem:[%s959_s4 + $0xd4] ss:$20 sps:$4 sm:$0xff]  }
   0x8   :  { %301 = vmatprep.subr.bf16.mxu0 %v595_v9  ;;  %342 = vmatprep.subr.bf16.mxu1 %v597_v10  ;;  %v613_v21 = vld [vmem:[%s959_s4 + $0xcc] ss:$20 sps:$4 sm:$0xff]   ;;  %v617_v23 = vld [vmem:[%s959_s4 + $0xc8] ss:$20 sps:$4 sm:$0xff]   ;;  %v618_v24 = vld [vmem:[%s959_s4 + $0xd0] ss:$20 sps:$4 sm:$0xff]  }
   0x9   :  { %v619_v25 = vld [vmem:[%s959_s4 + $0xf4] ss:$20 sps:$4 sm:$0xff]   ;;  %v621_v26 = vld [vmem:[%s959_s4 + $0xfc] ss:$20 sps:$4 sm:$0xff]   ;;  %v624_v28 = vld [vmem:[%s959_s4 + $0xf8] ss:$20 sps:$4 sm:$0xff]  }
   0xa   :  { %v623_v27 = vld [vmem:[%s959_s4 + $0xf0] ss:$20 sps:$4 sm:$0xff]   ;;  %v629_v31 = vld [vmem:[%s959_s4 + $0x118] ss:$20 sps:$4 sm:$0xff]   ;;  %v630_v32 = vld [vmem:[%s959_s4 + $0x120] ss:$20 sps:$4 sm:$0xff]  }
   0xb   :  { %302 = vmatpush1.bf16.msra.mxu0 %v599_v11  ;;  %343 = vmatpush1.bf16.msra.mxu1 %v600_v12  ;;  %v625_v29 = vld [vmem:[%s959_s4 + $0x11c] ss:$20 sps:$4 sm:$0xff]   ;;  %v627_v30 = vld [vmem:[%s959_s4 + $0x124] ss:$20 sps:$4 sm:$0xff]  }
   0xc   :  { %303 = vmatprep.subr.bf16.mxu0 %v601_v13  ;;  %344 = vmatprep.subr.bf16.mxu1 %v603_v14  ;;  %v32_v33 = vld [vmem:[%s958_s3] sm:$0xff] }
   0xf   :  { %304 = vmatpush1.bf16.msra.mxu0 %v605_v15  ;;  %345 = vmatpush1.bf16.msra.mxu1 %v606_v16 }
  0x10   :  { %305 = vmatprep.subr.bf16.mxu0 %v607_v17  ;;  %346 = vmatprep.subr.bf16.mxu1 %v609_v18 }
  0x13   :  { %306 = vmatpush1.bf16.msra.mxu0 %v611_v19  ;;  %347 = vmatpush1.bf16.msra.mxu1 %v612_v20 }
  0x14   :  { %307 = vmatprep.subr.bf16.mxu0 %v613_v21  ;;  %348 = vmatprep.subr.bf16.mxu1 %v615_v22 }
  0x17   :  { %308 = vmatpush1.bf16.msra.mxu0 %v617_v23  ;;  %349 = vmatpush1.bf16.msra.mxu1 %v618_v24 }
  0x18   :  { %309 = vmatprep.subr.bf16.mxu0 %v619_v25  ;;  %350 = vmatprep.subr.bf16.mxu1 %v621_v26 }
  0x1b   :  { %310 = vmatpush1.bf16.msra.mxu0 %v623_v27  ;;  %351 = vmatpush1.bf16.msra.mxu1 %v624_v28 }
  0x1c   :  { %311 = vmatprep.subr.bf16.mxu0 %v625_v29  ;;  %352 = vmatprep.subr.bf16.mxu1 %v627_v30 }
  0x1d   :  { %14 = vsyncpa [#allocation7], 0  ;;  %v35_v34 = vpack.c.bf16 %v32_v33, %v32_v33  ;;  %v631_v35 = vld [vmem:[%s959_s4 + $0x10] ss:$20 sps:$4 sm:$0xff]   ;;  %v730_v36 = vmov 0.0   ;;  %vm731_vm0 = vmmov 0  }
  0x1e   :  { %v632_v37 = vld [vmem:[%s959_s4 + $0x38] ss:$20 sps:$4 sm:$0xff]   ;;  %v633_v38 = vld [vmem:[%s959_s4 + $0x60] ss:$20 sps:$4 sm:$0xff]   ;;  %v634_v39 = vld [vmem:[%s959_s4 + $0x88] ss:$20 sps:$4 sm:$0xff]  }
  0x1f   :  { %312 = vmatpush1.bf16.msra.mxu0 %v629_v31  ;;  %353 = vmatpush1.bf16.msra.mxu1 %v630_v32  ;;  %v635_v40 = vld [vmem:[%s959_s4 + $0xb0] ss:$20 sps:$4 sm:$0xff]   ;;  %v636_v41 = vld [vmem:[%s959_s4 + $0xd8] ss:$20 sps:$4 sm:$0xff]   ;;  %v637_v42 = vld [vmem:[%s959_s4 + $0x100] ss:$20 sps:$4 sm:$0xff]  }
  0x20   :  { %557 = vmatprep.subr.bf16.mxu0 %v730_v36  ;;  %v638_v43 = vld [vmem:[%s959_s4 + $0x128] ss:$20 sps:$4 sm:$0xff]   ;;  %v84_v44 = vld [vmem:[%s955_s0] sm:$0xff]  ;;  %v86_v45 = vld [vmem:[%s955_s0 + $0x10] sm:$0xff]  ;;  %s732_s22 = smov [#allocation6]  }
  0x21   :  { %v87_v58 = vld [vmem:[%s955_s0 + $0x18] sm:$0xff]  ;;  %v85_v60 = vld [vmem:[%s955_s0 + $0x8] sm:$0xff]  ;;  %v30_v5 = vld [vmem:[%s957_s2] sm:$0xff]  ;;  %s479_s23 = sshll.u32 %s732_s22, 4  ;;  %s480_s23 = int_to_ptr.vmem [resolvable:$true] %s479_s23 }
  0x22   :  { %330 = vmatmul.mubr.bf16.vlgmr.msra.gmra.mrb[0].mxu0 %v35_v34  ;;  %371 = vmatmul.mubr.bf16.vlgmr.msra.gmra.mrb[0].mxu1 %v35_v34  ;;  %v88_v10 = vld [vmem:[%s955_s0 + $0x20] sm:$0xff]  ;;  %s659_s2 = scalar_lea.vmem %s480_s23, 128  ;;  %p664_p1 = scmp.lt.s32.totalorder %s480_s23, %s480_s23 }
  0x23   :  { %558 = vmatpush3.bf16.msra.mxu0 %v631_v35  ;;  %573 = vmatprep.mubr.msk.bf16.mxu0 %vm731_vm0, %v730_v36  ;;  %p660_p0 = scmp.ne.s32.totalorder %s480_s23, %s659_s2  ;;  %p665_p2 = scmp.lt.s32.totalorder %s659_s2, %s659_s2 }
  0x24   :  { %559 = vmatprep.subr.bf16.mxu0 %v730_v36 }
  0x25   :  { %p666_p3 = por %p665_p2, %p664_p1 }
  0x27   :  { %560 = vmatpush3.bf16.msra.mxu0 %v632_v37  ;;  %p667_p4 = pnand %p666_p3, %p660_p0 }
  0x28   :  { %561 = vmatprep.subr.bf16.mxu0 %v730_v36 }
  0x2b   :  { %562 = vmatpush3.bf16.msra.mxu0 %v633_v38 }
  0x2c   :  { %563 = vmatprep.subr.bf16.mxu0 %v730_v36 }
  0x2f   :  { %564 = vmatpush3.bf16.msra.mxu0 %v634_v39 }
  0x30   :  { %565 = vmatprep.subr.bf16.mxu0 %v730_v36 }
  0x33   :  { %566 = vmatpush3.bf16.msra.mxu0 %v635_v40 }
  0x34   :  { %567 = vmatprep.subr.bf16.mxu0 %v730_v36 }
  0x37   :  { %568 = vmatpush3.bf16.msra.mxu0 %v636_v41 }
  0x38   :  { %569 = vmatprep.subr.bf16.mxu0 %v730_v36 }
  0x3b   :  { %570 = vmatpush3.bf16.msra.mxu0 %v637_v42 }
  0x3c   :  { %571 = vmatprep.subr.bf16.mxu0 %v730_v36 }
  0x3f   :  { %572 = vmatpush3.bf16.msra.mxu0 %v638_v43 }
  0x42   :  { %574 = vmatmul.mubr.bf16.vlgmr.msra.gmra.mrb[4].mxu0 %v35_v34 }
  0xf5   :  { %v331_v46 = vpop.f32.mrb[0].mxu0  ;;  %v372_v47 = vpop.f32.mrb[0].mxu1 }
  0xf6   :  { %v332_v48 = vadd.f32 %v331_v46, %v84_v44  ;;  %v373_v49 = vadd.f32 %v372_v47, %v86_v45  ;;  %v333_v50 = vpop.f32.mrb[1].mxu0  ;;  %v374_v51 = vpop.f32.mrb[1].mxu1 }
  0xf7   :  { %v335_v52 = vpop.f32.mrb[2].mxu0  ;;  %v376_v53 = vpop.f32.mrb[2].mxu1  ;;  %v375_v59 = vadd.f32 %v374_v51, %v87_v58  ;;  %v334_v62 = vadd.f32 %v333_v50, %v85_v60 }
  0xf8   :  { %v544_v54 = vmul.f32 -1.442695, %v332_v48  ;;  %v545_v55 = vmul.f32 -1.442695, %v373_v49  ;;  %v336_v56 = vpop.f32.mrb[3].mxu0  ;;  %v377_v57 = vpop.f32.mrb[3].mxu1 }
  0xf9   :  { %v546_v61 = vmul.f32 -1.442695, %v375_v59 }
  0xfa   :  { %639 = vpow2.f32 %v544_v54 }
  0xfb   :  { %641 = vpow2.f32 %v545_v55 }
  0xfc   :  { %643 = vpow2.f32 %v546_v61 }
  0xfd   :  { %645 = vtanh.f32 %v334_v62 }
 0x104   :  { %v640_v63 = vpop.eup %639 }
 0x105   :  { %v642_v0 = vpop.eup %641  ;;  %v422_v1 = vadd.f32 1.0, %v640_v63 }
 0x106   :  { %v429_v2 = vadd.f32 1.0, %v642_v0  ;;  %v644_v3 = vpop.eup %643 }
 0x107   :  { %647 = vrcp.f32 %v422_v1  ;;  %v646_v4 = vpop.eup %645  ;;  %v435_v7 = vadd.f32 1.0, %v644_v3 }
 0x108   :  { %649 = vrcp.f32 %v429_v2 }
 0x109   :  { %651 = vrcp.f32 %v435_v7 }
 0x111   :  { %v648_v6 = vpop.eup %647 }
 0x112   :  { %v650_v8 = vpop.eup %649  ;;  %v446_v9 = vmul.f32 %v648_v6, %v646_v4 }
 0x113   :  { %v445_v11 = vmul.f32 %v650_v8, %v30_v5 }
 0x115   :  { %v413_v12 = vpop.f32.mrb[4].mxu0  ;;  %v447_v13 = vadd.f32 %v446_v9, %v445_v11 }
 0x116   :  { %v414_v14 = vadd.f32 %v413_v12, %v88_v10  ;;  %v575_v15 = vpop.f32.mrb[5].mxu0 }
 0x117   :  { %v416_v16 = vpop.f32.mrb[6].mxu0  ;;  %653 = vtanh.f32 %v447_v13  ;;  %461 = vst [vmem:[#allocation6] sm:$0xff] %v447_v13 }
 0x118   :  { %v547_v17 = vmul.f32 -1.442695, %v414_v14  ;;  %v576_v18 = vpop.f32.mrb[7].mxu0 }
 0x119   :  { %670 = shalt.err (!%p667_p4)
}
 0x11a   :  { %s671_s26 = scalar_lea.hbm %s961_s6, 128 }
 0x11b   :  { %p672_p5 = scmp.ne.s32.totalorder %s961_s6, %s671_s26  ;;  %p675_p6 = scmp.lt.u32.totalorder %s671_s26, %s961_s6 }
 0x11d   :  { %p677_p7 = pnand %p675_p6, %p672_p5 }
 0x11f   :  { %680 = shalt.err (!%p677_p7)
}
 0x120   :  { %482 = dma.vmem_to_hbm [thread:$0]  %s480_s23, 128, %s961_s6, [#allocation7]   ;;  %655 = vpow2.f32 %v547_v17  ;;  %v652_v19 = vpop.eup %651  ;;  %v452_v25 = vld [vmem:[%s956_s1] sm:$0xff] }
 0x121   :  { %v654_v20 = vpop.eup %653  ;;  %s733_s12 = smov [#allocation4]   ;;  %s734_s14 = smov [#allocation8]  }
 0x122   :  { %v449_v21 = vmul.f32 %v654_v20, %v652_v19  ;;  %s469_s13 = sshll.u32 %s733_s12, 4  ;;  %s489_s15 = sshll.u32 %s734_s14, 4  ;;  %s470_s13 = int_to_ptr.vmem [resolvable:$true] %s469_s13  ;;  %s490_s15 = int_to_ptr.vmem [resolvable:$true] %s489_s15 }
 0x123   :  { %s681_s6 = scalar_lea.vmem %s470_s13, 128  ;;  %p686_p9 = scmp.lt.s32.totalorder %s470_s13, %s470_s13 }
 0x124   :  { %p682_p8 = scmp.ne.s32.totalorder %s470_s13, %s681_s6  ;;  %p687_p10 = scmp.lt.s32.totalorder %s681_s6, %s681_s6 }
 0x126   :  { %p688_p11 = por %p687_p10, %p686_p9 }
 0x128   :  { %p689_p12 = pnand %p688_p11, %p682_p8 }
 0x12a   :  { %v656_v22 = vpop.eup %655 }
 0x12b   :  { %v441_v23 = vadd.f32 1.0, %v656_v22 }
 0x12d   :  { %657 = vrcp.f32 %v441_v23 }
 0x137   :  { %v658_v24 = vpop.eup %657 }
 0x138   :  { %v450_v26 = vmul.f32 %v658_v24, %v449_v21  ;;  %v451_v27 = vsub.f32 1.0, %v658_v24 }
 0x13a   :  { %v453_v28 = vmul.f32 %v452_v25, %v451_v27 }
 0x13c   :  { %v454_v29 = vadd.f32 %v453_v28, %v450_v26 }
 0x13e   :  { %457 = vst [vmem:[#allocation4] sm:$0xff] %v454_v29  ;;  %462 = vst [vmem:[#allocation8] sm:$0xff] %v454_v29 }
 0x13f   :  { %692 = shalt.err (!%p689_p12)
}
 0x140   :  { %s693_s4 = scalar_lea.hbm %s960_s5, 128 }
 0x141   :  { %p694_p13 = scmp.ne.s32.totalorder %s960_s5, %s693_s4  ;;  %p697_p0 = scmp.lt.u32.totalorder %s693_s4, %s960_s5 }
 0x143   :  { %p699_p1 = pnand %p697_p0, %p694_p13 }
 0x145   :  { %702 = shalt.err (!%p699_p1)
}
 0x146   :  { %472 = dma.vmem_to_hbm [thread:$0]  %s470_s13, 128, %s960_s5, [#allocation5]  }
 0x147   :  { %s703_s23 = scalar_lea.vmem %s490_s15, 128  ;;  %p708_p3 = scmp.lt.s32.totalorder %s490_s15, %s490_s15 }
 0x148   :  { %p704_p2 = scmp.ne.s32.totalorder %s490_s15, %s703_s23  ;;  %p709_p4 = scmp.lt.s32.totalorder %s703_s23, %s703_s23 }
 0x14a   :  { %p710_p5 = por %p709_p4, %p708_p3 }
 0x14c   :  { %p711_p6 = pnand %p710_p5, %p704_p2 }
 0x14e   :  { %714 = shalt.err (!%p711_p6)
}
 0x14f   :  { %s715_s2 = scalar_lea.hbm %s962_s7, 128 }
 0x150   :  { %p716_p7 = scmp.ne.s32.totalorder %s962_s7, %s715_s2  ;;  %p719_p8 = scmp.lt.u32.totalorder %s715_s2, %s962_s7 }
 0x152   :  { %p721_p9 = pnand %p719_p8, %p716_p7 }
 0x154   :  { %724 = shalt.err (!%p721_p9)
}
 0x155   :  { %492 = dma.vmem_to_hbm [thread:$0]  %s490_s15, 128, %s962_s7, [#allocation7]  }
 0x156   :  { %725 = dma.done.wait [#allocation5], 128  }
 0x157   :  { %726 = vsyncadd [#allocation5], 4294967168 }
 0x158   :  { %727 = dma.done.wait [#allocation7], 256  }
 0x159   :  { %728 = vsyncadd [#allocation7], 4294967040 }
 0x15a   :  { %502 = vsyncpa [#allocation5], 1 }
 0x15b   :  { %503 = vsyncpa [#allocation7], 1 }

// kernel: highway_lstm_sequence.2
= control target key start
LH: loop header
LB: loop body
LE: loop exit
PB: predicated region body
PF: predicated region fallthrough
CT: control target
= control target key end

     0   :  { %12 = vsyncpa [#allocation3], 0  ;;  %s1006_s0 = inlined_call_operand.vmem [shape: bf16[8,128], index: 0, kind: input, shape index: {}]   ;;  %s1007_s1 = inlined_call_operand.hbm [shape: bf16[128,640], index: 1, kind: input, shape index: {}]   ;;  %s1008_s2 = inlined_call_operand.hbm [shape: f32[1,640], index: 2, kind: input, shape index: {}]   ;;  %s1009_s3 = inlined_call_operand.hbm [shape: bf16[128,128], index: 3, kind: input, shape index: {}]   ;;  %s1010_s4 = inlined_call_operand.hbm [shape: f32[1,128], index: 4, kind: input, shape index: {}]   ;;  %s1011_s5 = inlined_call_operand.vmem [shape: f32[8,640], index: 5, kind: output, shape index: {0}]   ;;  %s1012_s6 = inlined_call_operand.vmem [shape: f32[8,128], index: 6, kind: output, shape index: {1}]  }
   0x1   :  { %13 = vsyncpa [#allocation5], 0 }
   0x2   :  { %14 = vsyncpa [#allocation8], 0  ;;  %s884_s21 = smov [#allocation4]   ;;  %s885_s23 = smov [#allocation2]  }
   0x3   :  { %s35_s22 = sshll.u32 %s884_s21, 4  ;;  %s22_s24 = sshll.u32 %s885_s23, 4  ;;  %s36_s22 = int_to_ptr.vmem [resolvable:$true] %s35_s22  ;;  %s930_s24 = int_to_ptr.vmem [resolvable:$true] %s22_s24 }
   0x4   :  { %s790_s27 = scalar_lea.hbm %s1008_s2, 80 }
   0x5   :  { %p791_p0 = scmp.ne.s32.totalorder %s1008_s2, %s790_s27  ;;  %p794_p1 = scmp.lt.u32.totalorder %s790_s27, %s1008_s2 }
   0x7   :  { %p796_p2 = pnand %p794_p1, %p791_p0 }
   0x9   :  { %799 = shalt.err (!%p796_p2)
}
   0xa   :  { %s800_s8 = scalar_lea.vmem %s36_s22, 80  ;;  %s804_s9 = scalar_lea.vmem %s36_s22, 96 }
   0xb   :  { %p801_p3 = scmp.ne.s32.totalorder %s36_s22, %s800_s8  ;;  %p805_p4 = scmp.lt.s32.totalorder %s36_s22, %s36_s22 }
   0xc   :  { %p806_p5 = scmp.lt.s32.totalorder %s804_s9, %s800_s8 }
   0xe   :  { %p807_p6 = por %p806_p5, %p805_p4 }
  0x10   :  { %p808_p7 = pnand %p807_p6, %p801_p3 }
  0x12   :  { %811 = shalt.err (!%p808_p7)
}
  0x13   :  { %38 = dma.hbm_to_vmem [thread:$0]  %s1008_s2, 80, %s36_s22, [#allocation5]  }
  0x14   :  { %s812_s14 = scalar_lea.hbm %s1007_s1, 5120 }
  0x15   :  { %p813_p8 = scmp.ne.s32.totalorder %s1007_s1, %s812_s14  ;;  %p816_p9 = scmp.lt.u32.totalorder %s812_s14, %s1007_s1 }
  0x17   :  { %p818_p10 = pnand %p816_p9, %p813_p8 }
  0x19   :  { %821 = shalt.err (!%p818_p10)
}
  0x1a   :  { %s822_s19 = scalar_lea.vmem %s930_s24, 5120  ;;  %p827_p12 = scmp.lt.s32.totalorder %s930_s24, %s930_s24 }
  0x1b   :  { %p823_p11 = scmp.ne.s32.totalorder %s930_s24, %s822_s19  ;;  %p828_p13 = scmp.lt.s32.totalorder %s822_s19, %s822_s19 }
  0x1d   :  { %p829_p0 = por %p828_p13, %p827_p12 }
  0x1f   :  { %p830_p1 = pnand %p829_p0, %p823_p11 }
  0x21   :  { %833 = shalt.err (!%p830_p1)
}
  0x22   :  { %s886_s2 = smov 320   ;;  %s887_s20 = smov 20  }
  0x23   :  { %28 = dma.hbm_to_vmem [thread:$0]  %s1007_s1, 5120, %s930_s24, [#allocation3], %s886_s2, %s886_s2, %s887_s20  }
  0x24   :  { %s888_s23 = smov [#allocation6]   ;;  %s834_s28 = scalar_lea.hbm %s1009_s3, 1024 }
  0x25   :  { %s44_s25 = sshll.u32 %s888_s23, 4  ;;  %p835_p2 = scmp.ne.s32.totalorder %s1009_s3, %s834_s28  ;;  %s45_s25 = int_to_ptr.vmem [resolvable:$true] %s44_s25 }
  0x26   :  { %p838_p3 = scmp.lt.u32.totalorder %s834_s28, %s1009_s3 }
  0x28   :  { %p840_p4 = pnand %p838_p3, %p835_p2 }
  0x2a   :  { %843 = shalt.err (!%p840_p4)
}
  0x2b   :  { %s844_s9 = scalar_lea.vmem %s45_s25, 1024  ;;  %p849_p6 = scmp.lt.s32.totalorder %s45_s25, %s45_s25 }
  0x2c   :  { %p845_p5 = scmp.ne.s32.totalorder %s45_s25, %s844_s9  ;;  %p850_p7 = scmp.lt.s32.totalorder %s844_s9, %s844_s9 }
  0x2e   :  { %p851_p8 = por %p850_p7, %p849_p6 }
  0x30   :  { %p852_p9 = pnand %p851_p8, %p845_p5 }
  0x32   :  { %855 = shalt.err (!%p852_p9)
}
  0x33   :  { %s889_s1 = smov 64   ;;  %s890_s24 = smov 4  }
  0x34   :  { %50 = dma.hbm_to_vmem [thread:$0]  %s1009_s3, 1024, %s45_s25, [#allocation5], %s889_s1, %s889_s1, %s890_s24  }
  0x35   :  { %s891_s12 = smov [#allocation7]   ;;  %s856_s16 = scalar_lea.hbm %s1010_s4, 16 }
  0x36   :  { %s57_s13 = sshll.u32 %s891_s12, 4  ;;  %p857_p10 = scmp.ne.s32.totalorder %s1010_s4, %s856_s16  ;;  %s58_s13 = int_to_ptr.vmem [resolvable:$true] %s57_s13 }
  0x37   :  { %p860_p11 = scmp.lt.u32.totalorder %s856_s16, %s1010_s4 }
  0x39   :  { %p862_p12 = pnand %p860_p11, %p857_p10 }
  0x3b   :  { %865 = shalt.err (!%p862_p12)
}
  0x3c   :  { %s866_s20 = scalar_lea.vmem %s58_s13, 16  ;;  %s870_s3 = scalar_lea.vmem %s58_s13, 32 }
  0x3d   :  { %p867_p13 = scmp.ne.s32.totalorder %s58_s13, %s866_s20  ;;  %p871_p0 = scmp.lt.s32.totalorder %s58_s13, %s58_s13 }
  0x3e   :  { %p872_p1 = scmp.lt.s32.totalorder %s870_s3, %s866_s20 }
  0x40   :  { %p873_p2 = por %p872_p1, %p871_p0 }
  0x42   :  { %p874_p3 = pnand %p873_p2, %p867_p13 }
  0x44   :  { %877 = shalt.err (!%p874_p3)
}
  0x45   :  { %60 = dma.hbm_to_vmem [thread:$0]  %s1010_s4, 16, %s58_s13, [#allocation8]  }
  0x46   :  { %878 = dma.done.wait [#allocation3], 5120  }
  0x47   :  { %879 = vsyncadd [#allocation3], 4294962176 }
  0x48   :  { %880 = dma.done.wait [#allocation5], 1104  }
  0x49   :  { %881 = vsyncadd [#allocation5], 4294966192 }
  0x4a   :  { %882 = dma.done.wait [#allocation8], 16  }
  0x4b   :  { %883 = vsyncadd [#allocation8], 4294967280  ;;  %v892_v0 = vmov 0   ;;  %v726_v1 = vld [vmem:[#allocation2 + $0x4] ss:$20 sps:$4 sm:$0xff]   ;;  %v893_v36 = vmov 0.0   ;;  %v125_v51 = vlaneseq }
  0x4c   :  { %390 = vmatprep.mubr.bf16.mxu0 %v892_v0  ;;  %431 = vmatprep.mubr.bf16.mxu1 %v892_v0  ;;  %v728_v2 = vld [vmem:[#allocation2 + $0xc] ss:$20 sps:$4 sm:$0xff]   ;;  %v731_v4 = vld [vmem:[#allocation2 + $0x8] ss:$20 sps:$4 sm:$0xff]   ;;  %v737_v8 = vld [vmem:[#allocation2 + $0x30] ss:$20 sps:$4 sm:$0xff]  }
  0x4d   :  { %358 = vmatprep.subr.bf16.mxu0 %v726_v1  ;;  %v730_v3 = vld [vmem:[#allocation2] ss:$20 sps:$4 sm:$0xff]   ;;  %399 = vmatprep.subr.bf16.mxu1 %v728_v2  ;;  %v736_v7 = vld [vmem:[#allocation2 + $0x28] ss:$20 sps:$4 sm:$0xff]   ;;  %v742_v11 = vld [vmem:[#allocation2 + $0x50] ss:$20 sps:$4 sm:$0xff]  }
  0x4e   :  { %v732_v5 = vld [vmem:[#allocation2 + $0x2c] ss:$20 sps:$4 sm:$0xff]   ;;  %359 = vmatpush1.bf16.msra.mxu0 %v730_v3  ;;  %400 = vmatpush1.bf16.msra.mxu1 %v731_v4  ;;  %v734_v6 = vld [vmem:[#allocation2 + $0x34] ss:$20 sps:$4 sm:$0xff]   ;;  %v740_v10 = vld [vmem:[#allocation2 + $0x5c] ss:$20 sps:$4 sm:$0xff]  }
  0x4f   :  { %360 = vmatprep.subr.bf16.mxu0 %v732_v5  ;;  %401 = vmatprep.subr.bf16.mxu1 %v734_v6  ;;  %v738_v9 = vld [vmem:[#allocation2 + $0x54] ss:$20 sps:$4 sm:$0xff]   ;;  %v743_v12 = vld [vmem:[#allocation2 + $0x58] ss:$20 sps:$4 sm:$0xff]   ;;  %v744_v13 = vld [vmem:[#allocation2 + $0x7c] ss:$20 sps:$4 sm:$0xff]  }
  0x50   :  { %v746_v14 = vld [vmem:[#allocation2 + $0x84] ss:$20 sps:$4 sm:$0xff]   ;;  %v749_v16 = vld [vmem:[#allocation2 + $0x80] ss:$20 sps:$4 sm:$0xff]   ;;  %v755_v20 = vld [vmem:[#allocation2 + $0xa8] ss:$20 sps:$4 sm:$0xff]  }
  0x51   :  { %v748_v15 = vld [vmem:[#allocation2 + $0x78] ss:$20 sps:$4 sm:$0xff]   ;;  %v754_v19 = vld [vmem:[#allocation2 + $0xa0] ss:$20 sps:$4 sm:$0xff]   ;;  %v760_v23 = vld [vmem:[#allocation2 + $0xc8] ss:$20 sps:$4 sm:$0xff]  }
  0x52   :  { %361 = vmatpush1.bf16.msra.mxu0 %v736_v7  ;;  %402 = vmatpush1.bf16.msra.mxu1 %v737_v8  ;;  %v750_v17 = vld [vmem:[#allocation2 + $0xa4] ss:$20 sps:$4 sm:$0xff]   ;;  %v752_v18 = vld [vmem:[#allocation2 + $0xac] ss:$20 sps:$4 sm:$0xff]   ;;  %v758_v22 = vld [vmem:[#allocation2 + $0xd4] ss:$20 sps:$4 sm:$0xff]  }
  0x53   :  { %362 = vmatprep.subr.bf16.mxu0 %v738_v9  ;;  %403 = vmatprep.subr.bf16.mxu1 %v740_v10  ;;  %v756_v21 = vld [vmem:[#allocation2 + $0xcc] ss:$20 sps:$4 sm:$0xff]   ;;  %v761_v24 = vld [vmem:[#allocation2 + $0xd0] ss:$20 sps:$4 sm:$0xff]   ;;  %v762_v25 = vld [vmem:[#allocation2 + $0xf4] ss:$20 sps:$4 sm:$0xff]  }
  0x54   :  { %v764_v26 = vld [vmem:[#allocation2 + $0xfc] ss:$20 sps:$4 sm:$0xff]   ;;  %v767_v28 = vld [vmem:[#allocation2 + $0xf8] ss:$20 sps:$4 sm:$0xff]   ;;  %v773_v32 = vld [vmem:[#allocation2 + $0x120] ss:$20 sps:$4 sm:$0xff]  }
  0x55   :  { %v766_v27 = vld [vmem:[#allocation2 + $0xf0] ss:$20 sps:$4 sm:$0xff]   ;;  %v772_v31 = vld [vmem:[#allocation2 + $0x118] ss:$20 sps:$4 sm:$0xff]   ;;  %v74_v33 = vld [vmem:[%s1006_s0] sm:$0xf] }
  0x56   :  { %363 = vmatpush1.bf16.msra.mxu0 %v742_v11  ;;  %404 = vmatpush1.bf16.msra.mxu1 %v743_v12  ;;  %v768_v29 = vld [vmem:[#allocation2 + $0x11c] ss:$20 sps:$4 sm:$0xff]   ;;  %v770_v30 = vld [vmem:[#allocation2 + $0x124] ss:$20 sps:$4 sm:$0xff]   ;;  %vm894_vm0 = vmmov 0   ;;  %v126_v52 = vshrl.u32 %v125_v51, 7 }
  0x57   :  { %364 = vmatprep.subr.bf16.mxu0 %v744_v13  ;;  %405 = vmatprep.subr.bf16.mxu1 %v746_v14  ;;  %v774_v34 = vld [vmem:[#allocation2 + $0x10] ss:$20 sps:$4 sm:$0xff]   ;;  %v776_v37 = vld [vmem:[#allocation2 + $0x38] ss:$20 sps:$4 sm:$0xff]   ;;  %v778_v39 = vld [vmem:[#allocation2 + $0x60] ss:$20 sps:$4 sm:$0xff]  }
  0x58   :  { %v775_v35 = vld [vmem:[#allocation6] sm:$0xff]   ;;  %v777_v38 = vld [vmem:[#allocation6 + $0x8] sm:$0xff]   ;;  %v779_v40 = vld [vmem:[#allocation6 + $0x10] sm:$0xff]   ;;  %v127_v53 = vsub.s32 0, %v126_v52  ;;  %v135_v54 = vsub.s32 2, %v126_v52  ;;  %v131_v56 = vsub.s32 1, %v126_v52 }
  0x59   :  { %v780_v41 = vld [vmem:[#allocation2 + $0x88] ss:$20 sps:$4 sm:$0xff]   ;;  %v782_v43 = vld [vmem:[#allocation2 + $0xb0] ss:$20 sps:$4 sm:$0xff]   ;;  %v784_v45 = vld [vmem:[#allocation2 + $0xd8] ss:$20 sps:$4 sm:$0xff]  }
  0x5a   :  { %365 = vmatpush1.bf16.msra.mxu0 %v748_v15  ;;  %406 = vmatpush1.bf16.msra.mxu1 %v749_v16  ;;  %v781_v42 = vld [vmem:[#allocation6 + $0x18] sm:$0xff]   ;;  %v783_v44 = vld [vmem:[#allocation6 + $0x20] sm:$0xff]   ;;  %v785_v46 = vld [vmem:[#allocation6 + $0x28] sm:$0xff]   ;;  %v139_v57 = vsub.s32 3, %v126_v52  ;;  %v143_v10 = vsub.s32 4, %v126_v52 }
  0x5b   :  { %366 = vmatprep.subr.bf16.mxu0 %v750_v17  ;;  %407 = vmatprep.subr.bf16.mxu1 %v752_v18  ;;  %v786_v47 = vld [vmem:[#allocation2 + $0x100] ss:$20 sps:$4 sm:$0xff]   ;;  %v788_v49 = vld [vmem:[#allocation2 + $0x128] ss:$20 sps:$4 sm:$0xff]   ;;  %v648_v12 = vld [vmem:[#allocation7] ss:$0 sm:$0xff] }
  0x5c   :  { %v787_v48 = vld [vmem:[#allocation6 + $0x30] sm:$0xff]   ;;  %v789_v50 = vld [vmem:[#allocation6 + $0x38] sm:$0xff]  }
  0x5d   :  { %v123_v55 = vld [vmem:[#allocation4] sm:$0x1f] }
  0x5e   :  { %367 = vmatpush1.bf16.msra.mxu0 %v754_v19  ;;  %408 = vmatpush1.bf16.msra.mxu1 %v755_v20  ;;  %v128_v58 = vrot.slane %v123_v55, %v127_v53  ;;  %v136_v59 = vrot.slane %v123_v55, %v135_v54  ;;  %v132_v60 = vrot.slane %v123_v55, %v131_v56 }
  0x5f   :  { %368 = vmatprep.subr.bf16.mxu0 %v756_v21  ;;  %409 = vmatprep.subr.bf16.mxu1 %v758_v22  ;;  %v140_v61 = vrot.slane %v123_v55, %v139_v57  ;;  %v144_v11 = vrot.slane %v123_v55, %v143_v10 }
  0x62   :  { %369 = vmatpush1.bf16.msra.mxu0 %v760_v23  ;;  %410 = vmatpush1.bf16.msra.mxu1 %v761_v24 }
  0x63   :  { %370 = vmatprep.subr.bf16.mxu0 %v762_v25  ;;  %411 = vmatprep.subr.bf16.mxu1 %v764_v26 }
  0x66   :  { %371 = vmatpush1.bf16.msra.mxu0 %v766_v27  ;;  %412 = vmatpush1.bf16.msra.mxu1 %v767_v28 }
  0x67   :  { %372 = vmatprep.subr.bf16.mxu0 %v768_v29  ;;  %413 = vmatprep.subr.bf16.mxu1 %v770_v30 }
  0x6a   :  { %373 = vmatpush1.bf16.msra.mxu0 %v772_v31  ;;  %414 = vmatpush1.bf16.msra.mxu1 %v773_v32 }
  0x6b   :  { %675 = vmatprep.subr.bf16.mxu0 %v893_v36  ;;  %695 = vmatprep.subr.bf16.mxu1 %v893_v36 }
  0x6d   :  { %391 = vmatmul.mubr.bf16.vlgmr.msra.gmra.mrb[0].mxu0 %v74_v33  ;;  %432 = vmatmul.mubr.bf16.vlgmr.msra.gmra.mrb[0].mxu1 %v74_v33 }
  0x6e   :  { %676 = vmatpush3.bf16.msra.mxu0 %v774_v34  ;;  %696 = vmatpush3.bf16.msra.mxu1 %v775_v35 }
  0x6f   :  { %677 = vmatprep.subr.bf16.mxu0 %v893_v36  ;;  %697 = vmatprep.subr.bf16.mxu1 %v893_v36 }
  0x70   :  { %691 = vmatprep.mubr.msk.bf16.mxu0 %vm894_vm0, %v893_v36  ;;  %711 = vmatprep.mubr.msk.bf16.mxu1 %vm894_vm0, %v893_v36 }
  0x72   :  { %678 = vmatpush3.bf16.msra.mxu0 %v776_v37  ;;  %698 = vmatpush3.bf16.msra.mxu1 %v777_v38 }
  0x73   :  { %679 = vmatprep.subr.bf16.mxu0 %v893_v36  ;;  %699 = vmatprep.subr.bf16.mxu1 %v893_v36 }
  0x76   :  { %680 = vmatpush3.bf16.msra.mxu0 %v778_v39  ;;  %700 = vmatpush3.bf16.msra.mxu1 %v779_v40 }
  0x77   :  { %681 = vmatprep.subr.bf16.mxu0 %v893_v36  ;;  %701 = vmatprep.subr.bf16.mxu1 %v893_v36 }
  0x7a   :  { %682 = vmatpush3.bf16.msra.mxu0 %v780_v41  ;;  %702 = vmatpush3.bf16.msra.mxu1 %v781_v42 }
  0x7b   :  { %683 = vmatprep.subr.bf16.mxu0 %v893_v36  ;;  %703 = vmatprep.subr.bf16.mxu1 %v893_v36 }
  0x7e   :  { %684 = vmatpush3.bf16.msra.mxu0 %v782_v43  ;;  %704 = vmatpush3.bf16.msra.mxu1 %v783_v44 }
  0x7f   :  { %685 = vmatprep.subr.bf16.mxu0 %v893_v36  ;;  %705 = vmatprep.subr.bf16.mxu1 %v893_v36 }
  0x82   :  { %686 = vmatpush3.bf16.msra.mxu0 %v784_v45  ;;  %706 = vmatpush3.bf16.msra.mxu1 %v785_v46 }
  0x83   :  { %687 = vmatprep.subr.bf16.mxu0 %v893_v36  ;;  %707 = vmatprep.subr.bf16.mxu1 %v893_v36 }
  0x86   :  { %688 = vmatpush3.bf16.msra.mxu0 %v786_v47  ;;  %708 = vmatpush3.bf16.msra.mxu1 %v787_v48 }
  0x87   :  { %689 = vmatprep.subr.bf16.mxu0 %v893_v36  ;;  %709 = vmatprep.subr.bf16.mxu1 %v893_v36 }
  0x8a   :  { %690 = vmatpush3.bf16.msra.mxu0 %v788_v49  ;;  %710 = vmatpush3.bf16.msra.mxu1 %v789_v50 }
  0x8d   :  { %692 = vmatmul.mubr.bf16.vlgmr.msra.gmra.mrb[4].mxu0 %v74_v33  ;;  %712 = vmatmul.mubr.bf16.vlgmr.msra.gmra.mrb[4].mxu1 %v74_v33 }
 0x140   :  { %v392_v62 = vpop.f32.mrb[0].mxu0  ;;  %v433_v63 = vpop.f32.mrb[0].mxu1 }
 0x141   :  { %v393_v0 = vadd.f32 %v392_v62, %v128_v58  ;;  %v434_v1 = vadd.f32 %v433_v63, %v136_v59  ;;  %v394_v2 = vpop.f32.mrb[1].mxu0  ;;  %v435_v3 = vpop.f32.mrb[1].mxu1 }
 0x142   :  { %v395_v4 = vadd.f32 %v394_v2, %v132_v60  ;;  %v436_v5 = vadd.f32 %v435_v3, %v140_v61  ;;  %v396_v6 = vpop.f32.mrb[2].mxu0  ;;  %v437_v7 = vpop.f32.mrb[2].mxu1 }
 0x143   :  { %480 = vst [vmem:[%s1011_s5] sm:$0xff] %v393_v0  ;;  %482 = vst [vmem:[%s1011_s5 + $0x10] sm:$0xff] %v434_v1  ;;  %v397_v8 = vpop.f32.mrb[3].mxu0  ;;  %v438_v9 = vpop.f32.mrb[3].mxu1 }
 0x144   :  { %481 = vst [vmem:[%s1011_s5 + $0x8] sm:$0xff] %v395_v4  ;;  %483 = vst [vmem:[%s1011_s5 + $0x18] sm:$0xff] %v436_v5 }
 0x160   :  { %v474_v13 = vpop.f32.mrb[4].mxu0  ;;  %v590_v14 = vpop.f32.mrb[4].mxu1 }
 0x161   :  { %v475_v15 = vadd.f32 %v474_v13, %v144_v11  ;;  %v591_v16 = vadd.f32 %v648_v12, %v590_v14  ;;  %v693_v17 = vpop.f32.mrb[5].mxu0  ;;  %v713_v18 = vpop.f32.mrb[5].mxu1 }
 0x162   :  { %v477_v19 = vpop.f32.mrb[6].mxu0  ;;  %v593_v20 = vpop.f32.mrb[6].mxu1 }
 0x163   :  { %484 = vst [vmem:[%s1011_s5 + $0x20] sm:$0xff] %v475_v15  ;;  %596 = vst [vmem:[%s1012_s6] sm:$0xff] %v591_v16  ;;  %v694_v21 = vpop.f32.mrb[7].mxu0  ;;  %v714_v22 = vpop.f32.mrb[7].mxu1 }
 0x164   :  { %605 = vsyncpa [#allocation3], 1 }
 0x165   :  { %606 = vsyncpa [#allocation5], 1 }
 0x166   :  { %607 = vsyncpa [#allocation8], 1 }

</bundles_post_ra>
